<compile_context>
chip_gen: v6e
topology: v6e:2x2x1
jax: 0.10.0
libtpu: 0.0.40
codegen_flags: <defaults>
</compile_context>

<pallas_src>
import jax
import jax.numpy as jnp
from jax.experimental import pallas as pl
from jax.experimental.pallas import tpu as pltpu


def _copy_kernel(x_ref, o_ref):
    # Lane-dense 2D tile pass-through; no per-element work in the body.
    o_ref[...] = x_ref[...]


# Sublane packing by dtype byte-width: f32 -> 8, bf16 -> 16, int8 -> 32.
_SUBLANE_ALIGN = {4: 8, 2: 16, 1: 32}

# Budgets (bytes).  Pallas double-buffers both the input and output block:
# footprint ~= 2 arrays x 2 buffers x tile bytes.
_SINGLE_BLOCK_BUDGET = 16 * 1024 * 1024   # 4 x full array <= 16 MiB -> grid=(1,1)
_TARGET_TILE_BYTES = 4 * 1024 * 1024      # tiled path: ~16 MiB footprint
_VMEM_LIMIT_BYTES = 32 * 1024 * 1024      # well under v7x's 64 MiB VMEM


def _round_down(x: int, m: int) -> int:
    return (x // m) * m


def _choose_tiles(B: int, F: int, itemsize: int, sub_align: int):
    """Pick (tb, tf).  Assumes B >= sub_align and F >= 128 (checked by caller).

    Never returns an oversized "full dimension" fallback: tiled dims are always
    aligned (tb multiple of sub_align, tf multiple of 128); ragged last blocks
    are handled by pl.cdiv + Pallas padding (safe for a pure copy).
    """
    total_bytes = B * F * itemsize
    # Single-block fast path: whole array in one grid step.
    if 4 * total_bytes <= _SINGLE_BLOCK_BUDGET:
        return B, F

    row_bytes = F * itemsize
    if sub_align * row_bytes <= _TARGET_TILE_BYTES:
        # Batch-only tiling: (tb, F) blocks are fully contiguous HBM regions.
        tb = _round_down(_TARGET_TILE_BYTES // row_bytes, sub_align)
        tb = max(sub_align, min(tb, _round_down(B, sub_align)))
        return tb, F

    # Very wide rows: feature-axis tiling with a fixed lane-dense tile.
    tf = max(128, _round_down(_TARGET_TILE_BYTES // (sub_align * itemsize), 128))
    tf = min(tf, _round_down(F, 128))
    tb = min(sub_align, B)
    return tb, tf


class BaseFeaturesExtractor:
    """JAX/Pallas port. Stores dims; forward() flattens observations."""

    def __init__(self, input_dims, features_dim: int = 0):
        assert features_dim > 0
        self._input_dims = tuple(input_dims)
        self._features_dim = features_dim

    @property
    def features_dim(self) -> int:
        return self._features_dim

    def forward(self, observations: jnp.ndarray) -> jnp.ndarray:
        assert observations.shape[1:] == self._input_dims
        B = observations.shape[0]
        F = 1
        for d in self._input_dims:
            F *= d

        # Metadata-only flatten (zero HBM bytes moved) in the wrapper.
        x2d = observations.reshape(B, F)

        itemsize = jnp.dtype(observations.dtype).itemsize
        sub_align = _SUBLANE_ALIGN.get(itemsize, 8)

        # Lane-sparse / sublane-sparse shapes: masked partial stores would make
        # the kernel strictly worse than the (free) reshape -> skip it.
        if F < 128 or B < sub_align:
            return x2d

        tb, tf = _choose_tiles(B, F, itemsize, sub_align)
        grid = (pl.cdiv(B, tb), pl.cdiv(F, tf))

        return pl.pallas_call(
            _copy_kernel,
            out_shape=jax.ShapeDtypeStruct((B, F), observations.dtype),
            grid=grid,
            in_specs=[pl.BlockSpec((tb, tf), lambda i, j: (i, j))],
            out_specs=pl.BlockSpec((tb, tf), lambda i, j: (i, j)),
            # Output aliases the freshly-reshaped input buffer so XLA can elide
            # the HBM round-trip of this pass-through anchor entirely.
            input_output_aliases={0: 0},
            compiler_params=pltpu.CompilerParams(
                # Independent axes -> shards across v7x's 2 TensorCores.
                dimension_semantics=("parallel", "parallel"),
                vmem_limit_bytes=_VMEM_LIMIT_BYTES,
            ),
            cost_estimate=pl.CostEstimate(
                flops=0,
                transcendentals=0,
                bytes_accessed=2 * B * F * itemsize,
            ),
        )(x2d)

    def __call__(self, observations):
        return self.forward(observations)


if __name__ == "__main__":
    key = jax.random.PRNGKey(0)

    # Kernel path: B a multiple of the f32 sublane packing (8), F = 1024 lanes.
    B, C, H, W = 8, 4, 16, 16
    x = jax.random.normal(key, (B, C, H, W), dtype=jnp.float32)

    extractor = BaseFeaturesExtractor(
        input_dims=(C, H, W), features_dim=C * H * W
    )
    feats = jax.block_until_ready(extractor(x))

    ref = x.reshape(B, C * H * W)
    assert feats.shape == (B, C * H * W)
    assert feats.dtype == x.dtype
    assert jnp.array_equal(feats, ref)

    # Also exercise the lane/sublane-sparse fast path (kernel skipped, reshape
    # returned directly).
    x_small = jax.random.normal(jax.random.PRNGKey(0), (2, 3, 4, 5),
                                dtype=jnp.float32)
    ex_small = BaseFeaturesExtractor(input_dims=(3, 4, 5), features_dim=60)
    feats_small = jax.block_until_ready(ex_small(x_small))
    assert jnp.array_equal(feats_small, x_small.reshape(2, 60))

    print("KERNEL_OK")
</pallas_src>

<mosaic_0001>
module attributes {stable_mosaic.version = 11 : i64} {
  func.func @_copy_kernel(%arg0: i32, %arg1: i32, %arg2: memref<8x1024xf32, #tpu.memory_space<vmem>>, %arg3: memref<8x1024xf32, #tpu.memory_space<vmem>>) attributes {dimension_semantics = [#tpu.dimension_semantics<parallel>, #tpu.dimension_semantics<parallel>], iteration_bounds = array<i64: 1, 1>, scalar_prefetch = 0 : i64, scratch_operands = 0 : i64, tpu.core_type = #tpu.core_type<tc>, window_params = [{transform_indices = @transform_0, window_bounds = array<i64: 8, 1024>}, {transform_indices = @transform_1, window_bounds = array<i64: 8, 1024>}]} {
    %c0 = arith.constant 0 : index
    %c0_0 = arith.constant 0 : index
    %0 = vector.load %arg2[%c0, %c0_0] : memref<8x1024xf32, #tpu.memory_space<vmem>>, vector<8x1024xf32>
    %c0_1 = arith.constant 0 : index
    %c0_2 = arith.constant 0 : index
    %1 = vector.load %arg3[%c0_1, %c0_2] : memref<8x1024xf32, #tpu.memory_space<vmem>>, vector<8x1024xf32>
    tpu.vector_store %arg3[%c0_1, %c0_2], %0 {strides = array<i32>} : memref<8x1024xf32, #tpu.memory_space<vmem>>, vector<8x1024xf32>,
    return
  }
  func.func @transform_0(%arg0: i32, %arg1: i32) -> (i32, i32) {
    %c0_i32 = arith.constant 0 : i32
    return %arg0, %arg1 : i32, i32
  }
  func.func @transform_1(%arg0: i32, %arg1: i32) -> (i32, i32) {
    %c0_i32 = arith.constant 0 : i32
    return %arg0, %arg1 : i32, i32
  }
}

</mosaic_0001>

<bundles_post_ra>
// kernel: tpu_custom_call.1
= control target key start
LH: loop header
LB: loop body
LE: loop exit
PB: predicated region body
PF: predicated region fallthrough
CT: control target
= control target key end

     0   :  { %6 = vsyncpa [#allocation3], 0  ;;  %s116_s0 = inlined_call_operand.hbm [shape: f32[8,1024], index: 0, kind: input, shape index: {}, may-alias: {0,1}]   ;;  %s117_s1 = inlined_call_operand.hbm [shape: f32[8,1024], index: 1, kind: output, shape index: {}, may-alias: {0,1}]  }
   0x1   :  { %7 = vsyncpa [#allocation4], 0  ;;  %s98_s6 = smov [#allocation2]  }
   0x2   :  { %s14_s7 = sshll.u32 %s98_s6, 4  ;;  %s15_s7 = int_to_ptr.vmem [resolvable:$true] %s14_s7 }
   0x3   :  { %s62_s8 = scalar_lea.vmem %s15_s7, 1024  ;;  %p67_p1 = scmp.lt.s32.totalorder %s15_s7, %s15_s7 }
   0x4   :  { %p63_p0 = scmp.ne.s32.totalorder %s15_s7, %s62_s8  ;;  %p68_p2 = scmp.lt.s32.totalorder %s62_s8, %s62_s8 }
   0x6   :  { %p69_p3 = por %p68_p2, %p67_p1 }
   0x8   :  { %p70_p4 = pnand %p69_p3, %p63_p0 }
   0xa   :  { %73 = shalt.err (!%p70_p4)
}
   0xb   :  { %17 = dma.hbm_to_vmem [thread:$0]  %s116_s0, 1024, %s15_s7, [#allocation3]  }
   0xc   :  { %94 = dma.done.wait [#allocation3], 1024  }
   0xd   :  { %95 = vsyncadd [#allocation3], 4294966272  ;;  %s99_s11 = smov [#allocation5]   ;;  %v21_v0 = vld [vmem:[#allocation2] sm:$0xff]  ;;  %v22_v1 = vld [vmem:[#allocation2 + $0x8] sm:$0xff] }
   0xe   :  { %s43_s12 = sshll.u32 %s99_s11, 4  ;;  %v23_v2 = vld [vmem:[#allocation2 + $0x10] sm:$0xff]  ;;  %29 = vst [vmem:[#allocation5] sm:$0xff] %v21_v0  ;;  %30 = vst [vmem:[#allocation5 + $0x8] sm:$0xff] %v22_v1  ;;  %v24_v3 = vld [vmem:[#allocation2 + $0x18] sm:$0xff]  ;;  %s44_s12 = int_to_ptr.vmem [resolvable:$true] %s43_s12 }
   0xf   :  { %31 = vst [vmem:[#allocation5 + $0x10] sm:$0xff] %v23_v2  ;;  %v25_v4 = vld [vmem:[#allocation2 + $0x20] sm:$0xff]  ;;  %v26_v5 = vld [vmem:[#allocation2 + $0x28] sm:$0xff]  ;;  %32 = vst [vmem:[#allocation5 + $0x18] sm:$0xff] %v24_v3  ;;  %s74_s0 = scalar_lea.vmem %s44_s12, 1024  ;;  %p79_p6 = scmp.lt.s32.totalorder %s44_s12, %s44_s12 }
  0x10   :  { %33 = vst [vmem:[#allocation5 + $0x20] sm:$0xff] %v25_v4  ;;  %34 = vst [vmem:[#allocation5 + $0x28] sm:$0xff] %v26_v5  ;;  %v27_v6 = vld [vmem:[#allocation2 + $0x30] sm:$0xff]  ;;  %v28_v7 = vld [vmem:[#allocation2 + $0x38] sm:$0xff]  ;;  %p75_p5 = scmp.ne.s32.totalorder %s44_s12, %s74_s0  ;;  %p80_p7 = scmp.lt.s32.totalorder %s74_s0, %s74_s0 }
  0x11   :  { %35 = vst [vmem:[#allocation5 + $0x30] sm:$0xff] %v27_v6  ;;  %36 = vst [vmem:[#allocation5 + $0x38] sm:$0xff] %v28_v7 }
  0x12   :  { %p81_p8 = por %p80_p7, %p79_p6 }
  0x14   :  { %p82_p9 = pnand %p81_p8, %p75_p5 }
  0x16   :  { %85 = shalt.err (!%p82_p9)
}
  0x17   :  { %46 = dma.vmem_to_hbm [thread:$0]  %s44_s12, 1024, %s117_s1, [#allocation4]  }
  0x18   :  { %96 = dma.done.wait [#allocation4], 1024  }
  0x19   :  { %97 = vsyncadd [#allocation4], 4294966272 }
  0x1a   :  { %50 = vsyncpa [#allocation3], 1 }
  0x1b   :  { %51 = vsyncpa [#allocation4], 1 }

</bundles_post_ra>
